<compile_context>
chip_gen: v7x
topology: tpu7x:2x2x1
jax: 0.10.0
libtpu: 0.0.40
codegen_flags: <defaults>
</compile_context>

<pallas_src>
import functools

import jax
import jax.numpy as jnp
from jax import lax
from jax.experimental import pallas as pl
from jax.experimental.pallas import tpu as pltpu


def _round_up(n, m):
    return ((n + m - 1) // m) * m


def _make_center_loss_kernel(batch, tb, unroll):
    """Kernel over one block of `tb` rows.

    Args (refs, in pallas order):
      lab_ref:  (B_pad,) int32 labels in SMEM (scalar prefetch).
      x_ref:    (tb, D)  block of features.
      c_ref:    (C, D)   full centers table, VMEM-resident (constant index_map).
      out_ref:  (1, 1)   per-block partial sum of clipped row distances.
      gath_ref: (tb, D)  VMEM scratch holding centers[labels[row]] for the block.
    """

    def kernel(lab_ref, x_ref, c_ref, out_ref, gath_ref):
        i = pl.program_id(0)
        base = i * tb

        # In-VMEM gather of the tb needed center rows (cheap vld's, no DMAs).
        def gather_row(r, carry):
            idx = lab_ref[base + r]
            gath_ref[pl.ds(r, 1), :] = c_ref[pl.ds(idx, 1), :]
            return carry

        lax.fori_loop(0, tb, gather_row, 0, unroll=unroll)

        x = x_ref[...].astype(jnp.float32)
        c = gath_ref[...].astype(jnp.float32)
        diff = x - c
        d = jnp.sum(diff * diff, axis=1, keepdims=True)          # (tb, 1)
        # Matches PyTorch: each surviving dist entry clamped to [1e-12, 1e12].
        d = jnp.clip(d, 1e-12, 1e12)

        # Mask out rows past the real batch (last partial block): select gives
        # exact 0 and blocks NaN/Inf from garbage-padded reads.
        row_ids = base + lax.broadcasted_iota(jnp.int32, (tb, 1), 0)
        d = jnp.where(row_ids < batch, d, 0.0)

        out_ref[...] = jnp.sum(d, axis=0, keepdims=True)         # (1, 1)

    return kernel


def center_loss(x, centers, labels, *, tb=None):
    """x: (B, D) float, centers: (C, D) float, labels: (B,) int -> scalar f32."""
    B, D = x.shape
    C, D2 = centers.shape
    assert D == D2
    labels = labels.astype(jnp.int32)

    # Row-block size: multiple of 8 (f32 sublane), capped so the in-kernel
    # gather loop stays reasonable and buffers fit VMEM comfortably.
    if tb is None:
        tb = min(512, _round_up(B, 8))
    tb = max(8, min(_round_up(tb, 8), _round_up(B, 8)))
    num_blocks = pl.cdiv(B, tb)
    b_pad = num_blocks * tb

    # Pad labels so SMEM reads for pad rows stay in-bounds (class 0 is valid;
    # those rows are masked out in-kernel anyway).
    labels_p = labels if b_pad == B else jnp.pad(labels, (0, b_pad - B))

    # Fully unroll the gather loop for small blocks (LLO visibility); partial
    # unroll for large ones to bound code size / vreg live ranges.
    unroll = True if tb <= 128 else 8

    kernel = _make_center_loss_kernel(B, tb, unroll)

    elem = 4  # f32 working precision
    centers_bytes = C * D * elem
    x_tile_bytes = tb * D * elem
    need = 2 * centers_bytes + 2 * x_tile_bytes + tb * D * elem + (2 << 20)
    # Budget against v7x's 64 MiB physical VMEM (32 MiB scoped default).
    vmem_limit = int(min(max(need, 16 << 20), 64 << 20))
    # TODO(synk): if C*D*4 no longer fits the VMEM budget, fall back to a manual
    # double-buffered DMA gather (centers with memory_space=pl.ANY +
    # pltpu.make_async_copy per row batch) instead of the resident-centers path.

    cost = pl.CostEstimate(
        flops=3 * B * D,
        transcendentals=0,
        bytes_accessed=B * D * elem + centers_bytes + b_pad * 4 + num_blocks * 4,
    )

    partial = pl.pallas_call(
        kernel,
        out_shape=jax.ShapeDtypeStruct((num_blocks, 1), jnp.float32),
        grid_spec=pltpu.PrefetchScalarGridSpec(
            num_scalar_prefetch=1,                      # labels -> SMEM
            grid=(num_blocks,),
            in_specs=[
                # x rows for this block
                pl.BlockSpec((tb, D), lambda i, lab: (i, 0)),
                # full centers table, constant index_map => loaded once, reused
                pl.BlockSpec((C, D), lambda i, lab: (0, 0)),
            ],
            out_specs=pl.BlockSpec((1, 1), lambda i, lab: (i, 0)),
            scratch_shapes=[pltpu.VMEM((tb, D), centers.dtype)],
        ),
        compiler_params=pltpu.CompilerParams(
            dimension_semantics=("parallel",),          # megacore-shardable on v7x
            vmem_limit_bytes=vmem_limit,
        ),
        cost_estimate=cost,
    )(labels_p, x, centers)

    # Every masked-out entry of the PyTorch (B, C) dist matrix is exactly 0 and
    # is clamped up to 1e-12, contributing a closed-form constant.
    const = jnp.float32(float(B) * float(C - 1) * 1e-12)
    return (jnp.sum(partial) + const) / B


def _center_loss_ref(x, centers, labels):
    """Pure-JAX reference with identical semantics to the PyTorch module."""
    B = x.shape[0]
    C = centers.shape[0]
    xf = x.astype(jnp.float32)
    cf = centers.astype(jnp.float32)
    distmat = (
        jnp.sum(xf**2, axis=1, keepdims=True)
        + jnp.sum(cf**2, axis=1, keepdims=True).T
        - 2.0 * xf @ cf.T
    )
    mask = (labels[:, None] == jnp.arange(C)[None, :]).astype(jnp.float32)
    return jnp.sum(jnp.clip(distmat * mask, 1e-12, 1e12)) / B


if __name__ == "__main__":
    # Small, deterministic shapes consistent with CenterLoss(num_classes, feat_dim).
    batch = 8
    num_classes = 751      # module default; no divisibility requirement
    feat_dim = 64

    key = jax.random.PRNGKey(0)
    kx, kc, kl = jax.random.split(key, 3)

    # Deterministic in-script parameter init (torch.randn equivalent).
    centers = jax.random.normal(kc, (num_classes, feat_dim), dtype=jnp.float32)
    x = jax.random.normal(kx, (batch, feat_dim), dtype=jnp.float32)
    labels = jax.random.randint(kl, (batch,), 0, num_classes, dtype=jnp.int32)

    loss = center_loss(x, centers, labels)
    loss = jax.block_until_ready(loss)

    ref = _center_loss_ref(x, centers, labels)
    assert jnp.allclose(loss, ref, rtol=1e-4, atol=1e-4), (loss, ref)

    print("KERNEL_OK")
</pallas_src>

<mosaic_0001>
module attributes {stable_mosaic.version = 11 : i64} {
  func.func @kernel(%arg0: i32, %arg1: memref<8xi32, #tpu.memory_space<smem>>, %arg2: memref<8x64xf32, #tpu.memory_space<vmem>>, %arg3: memref<751x64xf32, #tpu.memory_space<vmem>>, %arg4: memref<1x1xf32, #tpu.memory_space<vmem>>, %arg5: memref<8x64xf32, #tpu.memory_space<vmem>>) attributes {dimension_semantics = [#tpu.dimension_semantics<parallel>], iteration_bounds = array<i64: 1>, scalar_prefetch = 1 : i64, scratch_operands = 1 : i64, tpu.core_type = #tpu.core_type<tc>, window_params = [{transform_indices = @transform_0, window_bounds = array<i64: 8, 64>}, {pipeline_mode = #tpu.pipeline_mode<synchronous>, transform_indices = @transform_1, window_bounds = array<i64: 751, 64>}, {transform_indices = @transform_2, window_bounds = array<i64: 1, 1>}]} {
    %c8_i32 = arith.constant 8 : i32
    %0 = arith.muli %arg0, %c8_i32 : i32
    %c0_i32 = arith.constant 0 : i32
    %1 = arith.addi %0, %c0_i32 : i32
    %2 = arith.index_cast %1 : i32 to index
    %3 = memref.load %arg1[%2] : memref<8xi32, #tpu.memory_space<smem>>
    %4 = arith.index_cast %3 : i32 to index
    %c0 = arith.constant 0 : index
    %5 = vector.load %arg3[%4, %c0] : memref<751x64xf32, #tpu.memory_space<vmem>>, vector<1x64xf32>
    %6 = arith.index_cast %c0_i32 : i32 to index
    %c0_0 = arith.constant 0 : index
    %7 = vector.load %arg5[%6, %c0_0] : memref<8x64xf32, #tpu.memory_space<vmem>>, vector<1x64xf32>
    tpu.vector_store %arg5[%6, %c0_0], %5 {strides = array<i32>} : memref<8x64xf32, #tpu.memory_space<vmem>>, vector<1x64xf32>,
    %c1_i32 = arith.constant 1 : i32
    %8 = arith.addi %0, %c1_i32 : i32
    %9 = arith.index_cast %8 : i32 to index
    %10 = memref.load %arg1[%9] : memref<8xi32, #tpu.memory_space<smem>>
    %11 = arith.index_cast %10 : i32 to index
    %c0_1 = arith.constant 0 : index
    %12 = vector.load %arg3[%11, %c0_1] : memref<751x64xf32, #tpu.memory_space<vmem>>, vector<1x64xf32>
    %13 = arith.index_cast %c1_i32 : i32 to index
    %c0_2 = arith.constant 0 : index
    %14 = vector.load %arg5[%13, %c0_2] : memref<8x64xf32, #tpu.memory_space<vmem>>, vector<1x64xf32>
    tpu.vector_store %arg5[%13, %c0_2], %12 {strides = array<i32>} : memref<8x64xf32, #tpu.memory_space<vmem>>, vector<1x64xf32>,
    %c2_i32 = arith.constant 2 : i32
    %15 = arith.addi %0, %c2_i32 : i32
    %16 = arith.index_cast %15 : i32 to index
    %17 = memref.load %arg1[%16] : memref<8xi32, #tpu.memory_space<smem>>
    %18 = arith.index_cast %17 : i32 to index
    %c0_3 = arith.constant 0 : index
    %19 = vector.load %arg3[%18, %c0_3] : memref<751x64xf32, #tpu.memory_space<vmem>>, vector<1x64xf32>
    %20 = arith.index_cast %c2_i32 : i32 to index
    %c0_4 = arith.constant 0 : index
    %21 = vector.load %arg5[%20, %c0_4] : memref<8x64xf32, #tpu.memory_space<vmem>>, vector<1x64xf32>
    tpu.vector_store %arg5[%20, %c0_4], %19 {strides = array<i32>} : memref<8x64xf32, #tpu.memory_space<vmem>>, vector<1x64xf32>,
    %c3_i32 = arith.constant 3 : i32
    %22 = arith.addi %0, %c3_i32 : i32
    %23 = arith.index_cast %22 : i32 to index
    %24 = memref.load %arg1[%23] : memref<8xi32, #tpu.memory_space<smem>>
    %25 = arith.index_cast %24 : i32 to index
    %c0_5 = arith.constant 0 : index
    %26 = vector.load %arg3[%25, %c0_5] : memref<751x64xf32, #tpu.memory_space<vmem>>, vector<1x64xf32>
    %27 = arith.index_cast %c3_i32 : i32 to index
    %c0_6 = arith.constant 0 : index
    %28 = vector.load %arg5[%27, %c0_6] : memref<8x64xf32, #tpu.memory_space<vmem>>, vector<1x64xf32>
    tpu.vector_store %arg5[%27, %c0_6], %26 {strides = array<i32>} : memref<8x64xf32, #tpu.memory_space<vmem>>, vector<1x64xf32>,
    %c4_i32 = arith.constant 4 : i32
    %29 = arith.addi %0, %c4_i32 : i32
    %30 = arith.index_cast %29 : i32 to index
    %31 = memref.load %arg1[%30] : memref<8xi32, #tpu.memory_space<smem>>
    %32 = arith.index_cast %31 : i32 to index
    %c0_7 = arith.constant 0 : index
    %33 = vector.load %arg3[%32, %c0_7] : memref<751x64xf32, #tpu.memory_space<vmem>>, vector<1x64xf32>
    %34 = arith.index_cast %c4_i32 : i32 to index
    %c0_8 = arith.constant 0 : index
    %35 = vector.load %arg5[%34, %c0_8] : memref<8x64xf32, #tpu.memory_space<vmem>>, vector<1x64xf32>
    tpu.vector_store %arg5[%34, %c0_8], %33 {strides = array<i32>} : memref<8x64xf32, #tpu.memory_space<vmem>>, vector<1x64xf32>,
    %c5_i32 = arith.constant 5 : i32
    %36 = arith.addi %0, %c5_i32 : i32
    %37 = arith.index_cast %36 : i32 to index
    %38 = memref.load %arg1[%37] : memref<8xi32, #tpu.memory_space<smem>>
    %39 = arith.index_cast %38 : i32 to index
    %c0_9 = arith.constant 0 : index
    %40 = vector.load %arg3[%39, %c0_9] : memref<751x64xf32, #tpu.memory_space<vmem>>, vector<1x64xf32>
    %41 = arith.index_cast %c5_i32 : i32 to index
    %c0_10 = arith.constant 0 : index
    %42 = vector.load %arg5[%41, %c0_10] : memref<8x64xf32, #tpu.memory_space<vmem>>, vector<1x64xf32>
    tpu.vector_store %arg5[%41, %c0_10], %40 {strides = array<i32>} : memref<8x64xf32, #tpu.memory_space<vmem>>, vector<1x64xf32>,
    %c6_i32 = arith.constant 6 : i32
    %43 = arith.addi %0, %c6_i32 : i32
    %44 = arith.index_cast %43 : i32 to index
    %45 = memref.load %arg1[%44] : memref<8xi32, #tpu.memory_space<smem>>
    %46 = arith.index_cast %45 : i32 to index
    %c0_11 = arith.constant 0 : index
    %47 = vector.load %arg3[%46, %c0_11] : memref<751x64xf32, #tpu.memory_space<vmem>>, vector<1x64xf32>
    %48 = arith.index_cast %c6_i32 : i32 to index
    %c0_12 = arith.constant 0 : index
    %49 = vector.load %arg5[%48, %c0_12] : memref<8x64xf32, #tpu.memory_space<vmem>>, vector<1x64xf32>
    tpu.vector_store %arg5[%48, %c0_12], %47 {strides = array<i32>} : memref<8x64xf32, #tpu.memory_space<vmem>>, vector<1x64xf32>,
    %c7_i32 = arith.constant 7 : i32
    %50 = arith.addi %0, %c7_i32 : i32
    %51 = arith.index_cast %50 : i32 to index
    %52 = memref.load %arg1[%51] : memref<8xi32, #tpu.memory_space<smem>>
    %53 = arith.index_cast %52 : i32 to index
    %c0_13 = arith.constant 0 : index
    %54 = vector.load %arg3[%53, %c0_13] : memref<751x64xf32, #tpu.memory_space<vmem>>, vector<1x64xf32>
    %55 = arith.index_cast %c7_i32 : i32 to index
    %c0_14 = arith.constant 0 : index
    %56 = vector.load %arg5[%55, %c0_14] : memref<8x64xf32, #tpu.memory_space<vmem>>, vector<1x64xf32>
    tpu.vector_store %arg5[%55, %c0_14], %54 {strides = array<i32>} : memref<8x64xf32, #tpu.memory_space<vmem>>, vector<1x64xf32>,
    %c8_i32_15 = arith.constant 8 : i32
    %c0_16 = arith.constant 0 : index
    %c0_17 = arith.constant 0 : index
    %57 = vector.load %arg2[%c0_16, %c0_17] : memref<8x64xf32, #tpu.memory_space<vmem>>, vector<8x64xf32>
    %c0_18 = arith.constant 0 : index
    %c0_19 = arith.constant 0 : index
    %58 = vector.load %arg5[%c0_18, %c0_19] : memref<8x64xf32, #tpu.memory_space<vmem>>, vector<8x64xf32>
    %59 = arith.subf %57, %58 : vector<8x64xf32>
    %60 = arith.mulf %59, %59 : vector<8x64xf32>
    %cst = arith.constant dense<0.000000e+00> : vector<8xf32>
    %61 = vector.multi_reduction <add>, %60, %cst [1] : vector<8x64xf32> to vector<8xf32>
    %62 = vector.shape_cast %61 : vector<8xf32> to vector<8x1xf32>
    %cst_20 = arith.constant 9.99999996E-13 : f32
    %cst_21 = arith.constant 9.99999995E+11 : f32
    %63 = vector.broadcast %cst_20 : f32 to vector<8x1xf32>
    %64 = arith.maximumf %63, %62 : vector<8x1xf32>
    %65 = vector.broadcast %cst_21 : f32 to vector<8x1xf32>
    %66 = arith.minimumf %65, %64 : vector<8x1xf32>
    %67 = tpu.iota {dimensions = array<i32: 0>} : vector<8x1xi32>
    %68 = vector.broadcast %0 : i32 to vector<8x1xi32>
    %69 = arith.addi %68, %67 : vector<8x1xi32>
    %c8_i32_22 = arith.constant 8 : i32
    %70 = vector.broadcast %c8_i32_22 : i32 to vector<8x1xi32>
    %71 = arith.cmpi slt, %69, %70 : vector<8x1xi32>
    %cst_23 = arith.constant 0.000000e+00 : f32
    %72 = vector.broadcast %cst_23 : f32 to vector<8x1xf32>
    %73 = arith.select %71, %66, %72 : vector<8x1xi1>, vector<8x1xf32>
    %cst_24 = arith.constant dense<0.000000e+00> : vector<1xf32>
    %74 = vector.multi_reduction <add>, %73, %cst_24 [0] : vector<8x1xf32> to vector<1xf32>
    %75 = vector.shape_cast %74 : vector<1xf32> to vector<1x1xf32>
    %c0_25 = arith.constant 0 : index
    %c0_26 = arith.constant 0 : index
    %76 = vector.load %arg4[%c0_25, %c0_26] : memref<1x1xf32, #tpu.memory_space<vmem>>, vector<1x1xf32>
    tpu.vector_store %arg4[%c0_25, %c0_26], %75 {strides = array<i32>} : memref<1x1xf32, #tpu.memory_space<vmem>>, vector<1x1xf32>,
    return
  }
  func.func @transform_0(%arg0: i32, %arg1: memref<8xi32, #tpu.memory_space<smem>>) -> (i32, i32) {
    %c0_i32 = arith.constant 0 : i32
    %c0_i32_0 = arith.constant 0 : i32
    return %arg0, %c0_i32 : i32, i32
  }
  func.func @transform_1(%arg0: i32, %arg1: memref<8xi32, #tpu.memory_space<smem>>) -> (i32, i32) {
    %c0_i32 = arith.constant 0 : i32
    %c0_i32_0 = arith.constant 0 : i32
    %c0_i32_1 = arith.constant 0 : i32
    return %c0_i32, %c0_i32_0 : i32, i32
  }
  func.func @transform_2(%arg0: i32, %arg1: memref<8xi32, #tpu.memory_space<smem>>) -> (i32, i32) {
    %c0_i32 = arith.constant 0 : i32
    %c0_i32_0 = arith.constant 0 : i32
    return %arg0, %c0_i32 : i32, i32
  }
}

</mosaic_0001>

<bundles_post_ra>
// kernel: tpu_custom_call.1
= control target key start
LH: loop header
LB: loop body
LE: loop exit
PB: predicated region body
PF: predicated region fallthrough
CT: control target
= control target key end

     0   :  { %s225_s0 = inlined_call_operand.vmem [shape: s32[8], index: 0, kind: input, shape index: {}]   ;;  %s226_s1 = inlined_call_operand.vmem [shape: f32[8,64], index: 1, kind: input, shape index: {}]   ;;  %s227_s2 = inlined_call_operand.vmem [shape: f32[751,64], index: 2, kind: input, shape index: {}]   ;;  %s228_s3 = inlined_call_operand.hbm [shape: f32[1,1], index: 3, kind: output, shape index: {}]  }
   0x1   :  { %s8_s14 = sshll.u32 %s225_s0, 4  ;;  %s9_s14 = int_to_ptr.vmem [resolvable:$true] %s8_s14 }
   0x2   :  { %s115_s15 = scalar_lea.vmem %s9_s14, 16  ;;  %p120_p1 = scmp.lt.s32.totalorder %s9_s14, %s9_s14 }
   0x3   :  { %p116_p0 = scmp.ne.s32.totalorder %s9_s14, %s115_s15  ;;  %p121_p2 = scmp.lt.s32.totalorder %s115_s15, %s115_s15 }
   0x5   :  { %p122_p3 = por %p121_p2, %p120_p1 }
   0x7   :  { %p123_p4 = pnand %p122_p3, %p116_p0 }
   0x9   :  { %126 = shalt.err (!%p123_p4)  }
   0xa   :  { %s153_s16 = smov [#allocation4]  }
   0xb   :  { %11 = dma.vmem_to_smem %s9_s14, 16, %s153_s16, [#allocation3] }
   0xc   :  { %149 = dma.done.wait [#allocation3], 16 }
   0xd   :  { %150 = vsyncadd [#allocation3], 4294967280 }
   0xe   :  { %13 = sfence }
   0xf   :  { %s20_s17 = sld [smem:[#allocation4]]  ;;  %s106_s18 = sld [smem:[#allocation4 + $0x1]] }
  0x10   :  { %s107_s19 = sld [smem:[#allocation4 + $0x2]]  ;;  %s108_s20 = sld [smem:[#allocation4 + $0x3]] }
  0x11   :  { %s109_s21 = sld [smem:[#allocation4 + $0x4]]  ;;  %s110_s22 = sld [smem:[#allocation4 + $0x5]] }
  0x12   :  { %14 = vsyncpa [#allocation6], 0  ;;  %s111_s0 = sld [smem:[#allocation4 + $0x6]]  ;;  %s112_s23 = sld [smem:[#allocation4 + $0x7]]  ;;  %vm23_vm0 = vcmask 516096   ;;  %v60_v8 = vld [vmem:[%s226_s1] sm:$0xff] }
  0x13   :  { %vm64_vm1 = vcmask 523264   ;;  %vm82_vm2 = vcmask 0  }
  0x15   :  { %s21_s26 = scalar_lea.vmem %s227_s2, %s20_s17  ;;  %s27_s29 = scalar_lea.vmem %s227_s2, %s106_s18 }
  0x16   :  { %v22_v0 = vld [vmem:[%s21_s26] sm:$0x1]  ;;  %s32_s5 = scalar_lea.vmem %s227_s2, %s107_s19  ;;  %s37_s8 = scalar_lea.vmem %s227_s2, %s108_s20 }
  0x17   :  { %v28_v1 = vld [vmem:[%s27_s29] sm:$0x1]  ;;  %24 = vst.msk [vmem:[#allocation2] sm:$0x1] %vm23_vm0, %v22_v0  ;;  %s42_s11 = scalar_lea.vmem %s227_s2, %s109_s21  ;;  %s47_s14 = scalar_lea.vmem %s227_s2, %s110_s22 }
  0x18   :  { %29 = vst.msk [vmem:[#allocation2 + $0x1] sm:$0x1] %vm23_vm0, %v28_v1  ;;  %v33_v2 = vld [vmem:[%s32_s5] sm:$0x1]  ;;  %s52_s17 = scalar_lea.vmem %s227_s2, %s111_s0  ;;  %s57_s20 = scalar_lea.vmem %s227_s2, %s112_s23 }
  0x19   :  { %v38_v3 = vld [vmem:[%s37_s8] sm:$0x1]  ;;  %34 = vst.msk [vmem:[#allocation2 + $0x2] sm:$0x1] %vm23_vm0, %v33_v2  ;;  %s154_s2 = smov [#allocation5]  }
  0x1a   :  { %39 = vst.msk [vmem:[#allocation2 + $0x3] sm:$0x1] %vm23_vm0, %v38_v3  ;;  %v43_v4 = vld [vmem:[%s42_s11] sm:$0x1]  ;;  %s90_s0 = sshll.u32 %s154_s2, 4  ;;  %s91_s0 = int_to_ptr.vmem [resolvable:$true] %s90_s0 }
  0x1b   :  { %v48_v5 = vld [vmem:[%s47_s14] sm:$0x1]  ;;  %44 = vst.msk [vmem:[#allocation2 + $0x4] sm:$0x1] %vm23_vm0, %v43_v4  ;;  %s127_s1 = scalar_lea.vmem %s91_s0, 16  ;;  %s131_s23 = scalar_lea.vmem %s91_s0, 32 }
  0x1c   :  { %49 = vst.msk [vmem:[#allocation2 + $0x5] sm:$0x1] %vm23_vm0, %v48_v5  ;;  %v53_v6 = vld [vmem:[%s52_s17] sm:$0x1]  ;;  %p128_p5 = scmp.ne.s32.totalorder %s91_s0, %s127_s1  ;;  %p132_p6 = scmp.lt.s32.totalorder %s91_s0, %s91_s0 }
  0x1d   :  { %v58_v7 = vld [vmem:[%s57_s20] sm:$0x1]  ;;  %54 = vst.msk [vmem:[#allocation2 + $0x6] sm:$0x1] %vm23_vm0, %v53_v6  ;;  %p133_p7 = scmp.lt.s32.totalorder %s131_s23, %s127_s1 }
  0x1e   :  { %59 = vst.msk [vmem:[#allocation2 + $0x7] sm:$0x1] %vm23_vm0, %v58_v7 }
  0x1f   :  { %p134_p8 = por %p133_p7, %p132_p6 }
  0x21   :  { %p135_p9 = pnand %p134_p8, %p128_p5 }
  0x25   :  { %v61_v9 = vld [vmem:[#allocation2] sm:$0xff] }
  0x26   :  { %v62_v10 = vsub.f32 %v60_v8, %v61_v9 }
  0x28   :  { %v63_v11 = vmul.f32 %v62_v10, %v62_v10 }
  0x2a   :  { %v65_v12 = vsel %vm64_vm1, %v63_v11, 0.0 }
  0x2b   :  { %66 = vadd.xlane.f32.xlu0 %v65_v12 }
  0xb8   :  { %v67_v13 = vpop.xlane.xlu0 %66 }
  0xb9   :  { %v68_v14 = vmax.f32 %v67_v13, 1e-12 }
  0xbb   :  { %v69_v15 = vmin.f32 %v68_v14, 1e+12 }
  0xbd   :  { %v76_v16 = vrot.slane %v69_v15, 4 }
  0xbf   :  { %v77_v17 = vadd.f32 %v76_v16, %v69_v15 }
  0xc1   :  { %v78_v18 = vrot.slane %v77_v17, 2 }
  0xc3   :  { %v79_v19 = vadd.f32 %v78_v18, %v77_v17 }
  0xc5   :  { %v80_v20 = vrot.slane %v79_v19, 1 }
  0xc7   :  { %v81_v21 = vadd.f32 %v80_v20, %v79_v19 }
  0xc9   :  { %83 = vst.msk [vmem:[#allocation5] sm:$0x1] %vm82_vm2, %v81_v21 }
  0xca   :  { %138 = shalt.err (!%p135_p9)
}
  0xcb   :  { %s139_s26 = scalar_lea.hbm %s228_s3, 16 }
  0xcc   :  { %p140_p10 = scmp.ne.s32.totalorder %s228_s3, %s139_s26  ;;  %p143_p11 = scmp.lt.u32.totalorder %s139_s26, %s228_s3 }
  0xce   :  { %p145_p12 = pnand %p143_p11, %p140_p10 }
  0xd0   :  { %148 = shalt.err (!%p145_p12)
}
  0xd1   :  { %93 = dma.vmem_to_hbm [thread:$0]  %s91_s0, 16, %s228_s3, [#allocation6]  }
  0xd2   :  { %151 = dma.done.wait [#allocation6], 16  }
  0xd3   :  { %152 = vsyncadd [#allocation6], 4294967280 }
  0xd4   :  { %97 = vsyncpa [#allocation6], 1 }

</bundles_post_ra>
